<compile_context>
chip_gen: v5e
topology: v5e:2x2
jax: 0.10.0
libtpu: 0.0.40
codegen_flags: <defaults>
</compile_context>

<pallas_src>
import jax
import jax.numpy as jnp
from jax import lax
from jax.experimental import pallas as pl
from jax.experimental.pallas import tpu as pltpu

# TODO(synk): PyTorch loops until convergence (and can spin forever on 0/0 = nan);
# here we early-exit on the same criterion but also cap at MAX_ITERS iterations.
MAX_ITERS = 1000
CHECK_EVERY = 8  # ISTA steps per convergence check (amortizes reductions + branch)


def _make_sparsenet_kernel(B, M, K, r_lr, lmda):
    # d(MSELoss)/d(pred) = 2*(pred - img)/(B*M)  (mean reduction over all elements)
    scale = 2.0 / (B * M)
    step = r_lr * scale  # fold SGD lr and MSE scale into the precomputed operands
    lmda = float(lmda)

    def soft_threshold(x):
        # relu(x - lmda) - relu(-x - lmda)  ==  x - clip(x, -lmda, lmda)
        return x - jnp.clip(x, -lmda, lmda)

    def kernel(img_ref, w_ref, r_ref, pred_ref):
        img = img_ref[...]          # (B, M)
        w = w_ref[...]              # (M, K)

        # ---- Loop invariants (computed once) --------------------------------
        #   grad   = scale * (r @ Wt - img) @ W
        #   r_sgd  = r - r_lr * grad = r @ (I - step*WtW) + step*(img @ W)
        wtw = lax.dot_general(w, w, (((0,), (0,)), ((), ())),
                              preferred_element_type=jnp.float32)        # (K, K)
        row = lax.broadcasted_iota(jnp.int32, (K, K), 0)
        col = lax.broadcasted_iota(jnp.int32, (K, K), 1)
        eye = jnp.where(row == col, jnp.float32(1.0), jnp.float32(0.0))  # I_K
        a_prime = eye - step * wtw                                       # (K, K)
        b = step * jnp.dot(img, w, preferred_element_type=jnp.float32)   # (B, K)

        # ---- First iteration is trivial: r0 = 0 -> r0 @ A' = 0 --------------
        r1 = soft_threshold(b)
        # old_r was all-zeros -> den_sq == 0 -> definitely not converged yet.

        def cond(carry):
            i, conv, _ = carry
            return jnp.logical_and(i < MAX_ITERS, conv == 0)

        def body(carry):
            i, _, r = carry                                              # r: (B, K)

            def ista_step(_, pc):
                _, cur = pc
                nxt = soft_threshold(
                    jnp.dot(cur, a_prime, preferred_element_type=jnp.float32) + b)
                return (cur, nxt)

            # CHECK_EVERY unrolled ISTA steps with no reductions / branches inside.
            prev, cur = lax.fori_loop(0, CHECK_EVERY, ista_step, (r, r),
                                      unroll=True)

            # Convergence: ||cur - prev|| / ||prev|| < 0.01 (last step of the chunk),
            # expressed without sqrt/divide; den_sq == 0 reproduces torch's nan case.
            d = cur - prev
            num_sq = jnp.sum(d * d)
            den_sq = jnp.sum(prev * prev)
            conv_new = jnp.logical_and(den_sq > 0.0,
                                       num_sq < 1e-4 * den_sq).astype(jnp.int32)
            return (i + CHECK_EVERY, conv_new, cur)

        _, _, r_final = lax.while_loop(
            cond, body, (jnp.int32(1), jnp.int32(0), r1))

        r_ref[...] = r_final
        # pred = r @ W.T  (contract K of r with K of W; avoids materializing Wt).
        pred_ref[...] = lax.dot_general(r_final, w, (((1,), (1,)), ((), ())),
                                        preferred_element_type=jnp.float32)

    return kernel


def sparsenet_forward(img, W, r_lr=0.1, lmda=0.005):
    """Forward pass of SparseNet: returns (r, pred)."""
    B, M = img.shape
    Mw, K = W.shape
    assert Mw == M, "weight shape must be (M, K)"
    kernel = _make_sparsenet_kernel(B, M, K, r_lr, lmda)
    r, pred = pl.pallas_call(
        kernel,
        out_shape=(
            jax.ShapeDtypeStruct((B, K), jnp.float32),   # r
            jax.ShapeDtypeStruct((B, M), jnp.float32),   # pred
        ),
        in_specs=[
            pl.BlockSpec(memory_space=pltpu.MemorySpace.VMEM),  # img (B, M)
            pl.BlockSpec(memory_space=pltpu.MemorySpace.VMEM),  # W   (M, K)
        ],
        out_specs=(
            pl.BlockSpec(memory_space=pltpu.MemorySpace.VMEM),
            pl.BlockSpec(memory_space=pltpu.MemorySpace.VMEM),
        ),
    )(img, W)
    return r, pred


if __name__ == "__main__":
    # Small shapes consistent with the module: dictionary size K, image dim M.
    K, M, B = 128, 128, 8

    key = jax.random.PRNGKey(0)
    kw, kx = jax.random.split(key)

    # Deterministic parameter init: U.weight (M, K), columns normalized (dim=0),
    # matching SparseNet.normalize_weights().
    W = jax.random.normal(kw, (M, K), dtype=jnp.float32)
    W = W / jnp.linalg.norm(W, axis=0, keepdims=True)

    # Image batch; scaled so the very first thresholded SGD step produces
    # nonzero codes (otherwise the reference PyTorch loop would never converge).
    img = 50.0 * jax.random.normal(kx, (B, M), dtype=jnp.float32)

    r, pred = jax.jit(sparsenet_forward)(img, W)
    jax.block_until_ready((r, pred))
    assert r.shape == (B, K) and pred.shape == (B, M)
    assert bool(jnp.all(jnp.isfinite(r))) and bool(jnp.all(jnp.isfinite(pred)))
    print("KERNEL_OK")
</pallas_src>

<mosaic_0001>
module attributes {stable_mosaic.version = 11 : i64} {
  func.func @kernel(%arg0: memref<8x128xf32, #tpu.memory_space<vmem>>, %arg1: memref<128x128xf32, #tpu.memory_space<vmem>>, %arg2: memref<8x128xf32, #tpu.memory_space<vmem>>, %arg3: memref<8x128xf32, #tpu.memory_space<vmem>>) attributes {dimension_semantics = [], scalar_prefetch = 0 : i64, scratch_operands = 0 : i64, tpu.core_type = #tpu.core_type<tc>} {
    %c0 = arith.constant 0 : index
    %c0_0 = arith.constant 0 : index
    %0 = vector.load %arg0[%c0, %c0_0] : memref<8x128xf32, #tpu.memory_space<vmem>>, vector<8x128xf32>
    %c0_1 = arith.constant 0 : index
    %c0_2 = arith.constant 0 : index
    %1 = vector.load %arg1[%c0_1, %c0_2] : memref<128x128xf32, #tpu.memory_space<vmem>>, vector<128x128xf32>
    %cst = arith.constant dense<0.000000e+00> : vector<128x128xf32>
    %2 = tpu.matmul %1, %1, %cst {dimension_numbers = #tpu.dot_dimension_numbers<[0], [0], [1], [1], [0, 1, 1, 1], [], []>} : vector<128x128xf32>, vector<128x128xf32>, vector<128x128xf32> -> vector<128x128xf32>
    %3 = tpu.iota {dimensions = array<i32: 0>} : vector<128x128xi32>
    %4 = tpu.iota {dimensions = array<i32: 1>} : vector<128x128xi32>
    %5 = arith.cmpi eq, %3, %4 : vector<128x128xi32>
    %cst_3 = arith.constant 1.000000e+00 : f32
    %cst_4 = arith.constant 0.000000e+00 : f32
    %6 = vector.broadcast %cst_3 : f32 to vector<128x128xf32>
    %7 = vector.broadcast %cst_4 : f32 to vector<128x128xf32>
    %8 = arith.select %5, %6, %7 : vector<128x128xi1>, vector<128x128xf32>
    %cst_5 = arith.constant 1.95312503E-4 : f32
    %9 = vector.broadcast %cst_5 : f32 to vector<128x128xf32>
    %10 = arith.mulf %9, %2 : vector<128x128xf32>
    %11 = arith.subf %8, %10 : vector<128x128xf32>
    %cst_6 = arith.constant dense<0.000000e+00> : vector<8x128xf32>
    %12 = tpu.matmul %0, %1, %cst_6 {dimension_numbers = #tpu.dot_dimension_numbers<[1], [0], [0], [1], [0, 0, 1, 1], [], []>} : vector<8x128xf32>, vector<128x128xf32>, vector<8x128xf32> -> vector<8x128xf32>
    %cst_7 = arith.constant 1.95312503E-4 : f32
    %13 = vector.broadcast %cst_7 : f32 to vector<8x128xf32>
    %14 = arith.mulf %13, %12 : vector<8x128xf32>
    %cst_8 = arith.constant -5.000000e-03 : f32
    %cst_9 = arith.constant 5.000000e-03 : f32
    %15 = vector.broadcast %cst_8 : f32 to vector<8x128xf32>
    %16 = arith.maximumf %15, %14 : vector<8x128xf32>
    %17 = vector.broadcast %cst_9 : f32 to vector<8x128xf32>
    %18 = arith.minimumf %17, %16 : vector<8x128xf32>
    %19 = arith.subf %14, %18 : vector<8x128xf32>
    %c1_i32 = arith.constant 1 : i32
    %c0_i32 = arith.constant 0 : i32
    %20:3 = scf.while (%arg4 = %c1_i32, %arg5 = %c0_i32, %arg6 = %19) : (i32, i32, vector<8x128xf32>) -> (i32, i32, vector<8x128xf32>) {
      %c1000_i32 = arith.constant 1000 : i32
      %24 = arith.cmpi slt, %arg4, %c1000_i32 : i32
      %c0_i32_15 = arith.constant 0 : i32
      %25 = arith.cmpi eq, %arg5, %c0_i32_15 : i32
      %26 = arith.andi %24, %25 : i1
      scf.condition(%26) %arg4, %arg5, %arg6 : i32, i32, vector<8x128xf32>
    } do {
    ^bb0(%arg4: i32, %arg5: i32, %arg6: vector<8x128xf32>):
      %c0_i32_15 = arith.constant 0 : i32
      %cst_16 = arith.constant dense<0.000000e+00> : vector<8x128xf32>
      %24 = tpu.matmul %arg6, %11, %cst_16 {dimension_numbers = #tpu.dot_dimension_numbers<[1], [0], [0], [1], [0, 0, 1, 1], [], []>} : vector<8x128xf32>, vector<128x128xf32>, vector<8x128xf32> -> vector<8x128xf32>
      %25 = arith.addf %24, %14 : vector<8x128xf32>
      %cst_17 = arith.constant -5.000000e-03 : f32
      %cst_18 = arith.constant 5.000000e-03 : f32
      %26 = vector.broadcast %cst_17 : f32 to vector<8x128xf32>
      %27 = arith.maximumf %26, %25 : vector<8x128xf32>
      %28 = vector.broadcast %cst_18 : f32 to vector<8x128xf32>
      %29 = arith.minimumf %28, %27 : vector<8x128xf32>
      %30 = arith.subf %25, %29 : vector<8x128xf32>
      %c1_i32_19 = arith.constant 1 : i32
      %cst_20 = arith.constant dense<0.000000e+00> : vector<8x128xf32>
      %31 = tpu.matmul %30, %11, %cst_20 {dimension_numbers = #tpu.dot_dimension_numbers<[1], [0], [0], [1], [0, 0, 1, 1], [], []>} : vector<8x128xf32>, vector<128x128xf32>, vector<8x128xf32> -> vector<8x128xf32>
      %32 = arith.addf %31, %14 : vector<8x128xf32>
      %cst_21 = arith.constant -5.000000e-03 : f32
      %cst_22 = arith.constant 5.000000e-03 : f32
      %33 = vector.broadcast %cst_21 : f32 to vector<8x128xf32>
      %34 = arith.maximumf %33, %32 : vector<8x128xf32>
      %35 = vector.broadcast %cst_22 : f32 to vector<8x128xf32>
      %36 = arith.minimumf %35, %34 : vector<8x128xf32>
      %37 = arith.subf %32, %36 : vector<8x128xf32>
      %c2_i32 = arith.constant 2 : i32
      %cst_23 = arith.constant dense<0.000000e+00> : vector<8x128xf32>
      %38 = tpu.matmul %37, %11, %cst_23 {dimension_numbers = #tpu.dot_dimension_numbers<[1], [0], [0], [1], [0, 0, 1, 1], [], []>} : vector<8x128xf32>, vector<128x128xf32>, vector<8x128xf32> -> vector<8x128xf32>
      %39 = arith.addf %38, %14 : vector<8x128xf32>
      %cst_24 = arith.constant -5.000000e-03 : f32
      %cst_25 = arith.constant 5.000000e-03 : f32
      %40 = vector.broadcast %cst_24 : f32 to vector<8x128xf32>
      %41 = arith.maximumf %40, %39 : vector<8x128xf32>
      %42 = vector.broadcast %cst_25 : f32 to vector<8x128xf32>
      %43 = arith.minimumf %42, %41 : vector<8x128xf32>
      %44 = arith.subf %39, %43 : vector<8x128xf32>
      %c3_i32 = arith.constant 3 : i32
      %cst_26 = arith.constant dense<0.000000e+00> : vector<8x128xf32>
      %45 = tpu.matmul %44, %11, %cst_26 {dimension_numbers = #tpu.dot_dimension_numbers<[1], [0], [0], [1], [0, 0, 1, 1], [], []>} : vector<8x128xf32>, vector<128x128xf32>, vector<8x128xf32> -> vector<8x128xf32>
      %46 = arith.addf %45, %14 : vector<8x128xf32>
      %cst_27 = arith.constant -5.000000e-03 : f32
      %cst_28 = arith.constant 5.000000e-03 : f32
      %47 = vector.broadcast %cst_27 : f32 to vector<8x128xf32>
      %48 = arith.maximumf %47, %46 : vector<8x128xf32>
      %49 = vector.broadcast %cst_28 : f32 to vector<8x128xf32>
      %50 = arith.minimumf %49, %48 : vector<8x128xf32>
      %51 = arith.subf %46, %50 : vector<8x128xf32>
      %c4_i32 = arith.constant 4 : i32
      %cst_29 = arith.constant dense<0.000000e+00> : vector<8x128xf32>
      %52 = tpu.matmul %51, %11, %cst_29 {dimension_numbers = #tpu.dot_dimension_numbers<[1], [0], [0], [1], [0, 0, 1, 1], [], []>} : vector<8x128xf32>, vector<128x128xf32>, vector<8x128xf32> -> vector<8x128xf32>
      %53 = arith.addf %52, %14 : vector<8x128xf32>
      %cst_30 = arith.constant -5.000000e-03 : f32
      %cst_31 = arith.constant 5.000000e-03 : f32
      %54 = vector.broadcast %cst_30 : f32 to vector<8x128xf32>
      %55 = arith.maximumf %54, %53 : vector<8x128xf32>
      %56 = vector.broadcast %cst_31 : f32 to vector<8x128xf32>
      %57 = arith.minimumf %56, %55 : vector<8x128xf32>
      %58 = arith.subf %53, %57 : vector<8x128xf32>
      %c5_i32 = arith.constant 5 : i32
      %cst_32 = arith.constant dense<0.000000e+00> : vector<8x128xf32>
      %59 = tpu.matmul %58, %11, %cst_32 {dimension_numbers = #tpu.dot_dimension_numbers<[1], [0], [0], [1], [0, 0, 1, 1], [], []>} : vector<8x128xf32>, vector<128x128xf32>, vector<8x128xf32> -> vector<8x128xf32>
      %60 = arith.addf %59, %14 : vector<8x128xf32>
      %cst_33 = arith.constant -5.000000e-03 : f32
      %cst_34 = arith.constant 5.000000e-03 : f32
      %61 = vector.broadcast %cst_33 : f32 to vector<8x128xf32>
      %62 = arith.maximumf %61, %60 : vector<8x128xf32>
      %63 = vector.broadcast %cst_34 : f32 to vector<8x128xf32>
      %64 = arith.minimumf %63, %62 : vector<8x128xf32>
      %65 = arith.subf %60, %64 : vector<8x128xf32>
      %c6_i32 = arith.constant 6 : i32
      %cst_35 = arith.constant dense<0.000000e+00> : vector<8x128xf32>
      %66 = tpu.matmul %65, %11, %cst_35 {dimension_numbers = #tpu.dot_dimension_numbers<[1], [0], [0], [1], [0, 0, 1, 1], [], []>} : vector<8x128xf32>, vector<128x128xf32>, vector<8x128xf32> -> vector<8x128xf32>
      %67 = arith.addf %66, %14 : vector<8x128xf32>
      %cst_36 = arith.constant -5.000000e-03 : f32
      %cst_37 = arith.constant 5.000000e-03 : f32
      %68 = vector.broadcast %cst_36 : f32 to vector<8x128xf32>
      %69 = arith.maximumf %68, %67 : vector<8x128xf32>
      %70 = vector.broadcast %cst_37 : f32 to vector<8x128xf32>
      %71 = arith.minimumf %70, %69 : vector<8x128xf32>
      %72 = arith.subf %67, %71 : vector<8x128xf32>
      %c7_i32 = arith.constant 7 : i32
      %cst_38 = arith.constant dense<0.000000e+00> : vector<8x128xf32>
      %73 = tpu.matmul %72, %11, %cst_38 {dimension_numbers = #tpu.dot_dimension_numbers<[1], [0], [0], [1], [0, 0, 1, 1], [], []>} : vector<8x128xf32>, vector<128x128xf32>, vector<8x128xf32> -> vector<8x128xf32>
      %74 = arith.addf %73, %14 : vector<8x128xf32>
      %cst_39 = arith.constant -5.000000e-03 : f32
      %cst_40 = arith.constant 5.000000e-03 : f32
      %75 = vector.broadcast %cst_39 : f32 to vector<8x128xf32>
      %76 = arith.maximumf %75, %74 : vector<8x128xf32>
      %77 = vector.broadcast %cst_40 : f32 to vector<8x128xf32>
      %78 = arith.minimumf %77, %76 : vector<8x128xf32>
      %79 = arith.subf %74, %78 : vector<8x128xf32>
      %c8_i32 = arith.constant 8 : i32
      %80 = arith.subf %79, %72 : vector<8x128xf32>
      %81 = arith.mulf %80, %80 : vector<8x128xf32>
      %82 = vector.shape_cast %81 : vector<8x128xf32> to vector<1x8x128xf32>
      %cst_41 = arith.constant dense<0.000000e+00> : vector<1xf32>
      %83 = vector.multi_reduction <add>, %82, %cst_41 [1, 2] : vector<1x8x128xf32> to vector<1xf32>
      %84 = vector.shape_cast %83 : vector<1xf32> to vector<1x1x1xf32>
      %85 = vector.extract %84[0, 0, 0] : f32 from vector<1x1x1xf32>
      %86 = arith.mulf %72, %72 : vector<8x128xf32>
      %87 = vector.shape_cast %86 : vector<8x128xf32> to vector<1x8x128xf32>
      %cst_42 = arith.constant dense<0.000000e+00> : vector<1xf32>
      %88 = vector.multi_reduction <add>, %87, %cst_42 [1, 2] : vector<1x8x128xf32> to vector<1xf32>
      %89 = vector.shape_cast %88 : vector<1xf32> to vector<1x1x1xf32>
      %90 = vector.extract %89[0, 0, 0] : f32 from vector<1x1x1xf32>
      %cst_43 = arith.constant 0.000000e+00 : f32
      %91 = arith.cmpf ogt, %90, %cst_43 : f32
      %cst_44 = arith.constant 9.99999974E-5 : f32
      %92 = arith.mulf %cst_44, %90 : f32
      %93 = arith.cmpf olt, %85, %92 : f32
      %94 = arith.andi %91, %93 : i1
      %95 = arith.extui %94 : i1 to i32
      %c8_i32_45 = arith.constant 8 : i32
      %96 = arith.addi %arg4, %c8_i32_45 : i32
      scf.yield %96, %95, %79 : i32, i32, vector<8x128xf32>
    }
    %c0_10 = arith.constant 0 : index
    %c0_11 = arith.constant 0 : index
    %21 = vector.load %arg2[%c0_10, %c0_11] : memref<8x128xf32, #tpu.memory_space<vmem>>, vector<8x128xf32>
    tpu.vector_store %arg2[%c0_10, %c0_11], %20#2 {strides = array<i32>} : memref<8x128xf32, #tpu.memory_space<vmem>>, vector<8x128xf32>,
    %cst_12 = arith.constant dense<0.000000e+00> : vector<8x128xf32>
    %22 = tpu.matmul %20#2, %1, %cst_12 {dimension_numbers = #tpu.dot_dimension_numbers<[1], [1], [0], [0], [0, 0, 1, 0], [], []>} : vector<8x128xf32>, vector<128x128xf32>, vector<8x128xf32> -> vector<8x128xf32>
    %c0_13 = arith.constant 0 : index
    %c0_14 = arith.constant 0 : index
    %23 = vector.load %arg3[%c0_13, %c0_14] : memref<8x128xf32, #tpu.memory_space<vmem>>, vector<8x128xf32>
    tpu.vector_store %arg3[%c0_13, %c0_14], %22 {strides = array<i32>} : memref<8x128xf32, #tpu.memory_space<vmem>>, vector<8x128xf32>,
    return
  }
}

</mosaic_0001>

<bundles_post_ra>
// kernel: sparsenet_forward.1
= control target key start
LH: loop header
LB: loop body
LE: loop exit
PB: predicated region body
PF: predicated region fallthrough
CT: control target
= control target key end

     0   :  { %9 = vsyncpa [#allocation3], 0  ;;  %s1151_s0 = inlined_call_operand.hbm [shape: f32[8,128], index: 0, kind: input, shape index: {}]   ;;  %s1152_s1 = inlined_call_operand.hbm [shape: f32[128,128], index: 1, kind: input, shape index: {}]   ;;  %s1153_s2 = inlined_call_operand.hbm [shape: f32[8,128], index: 2, kind: output, shape index: {0}]   ;;  %s1154_s3 = inlined_call_operand.hbm [shape: f32[8,128], index: 3, kind: output, shape index: {1}]  }
   0x1   :  { %10 = vsyncpa [#allocation6], 0 }
   0x2   :  { %11 = vsyncpa [#allocation4], 0 }
   0x3   :  { %12 = vsyncpa [#allocation9], 0  ;;  %s18_s14 = sshll.u32 %s1151_s0, 4  ;;  %s744_s15 = smov [#allocation2]   ;;  %s19_s14 = int_to_ptr.hbm [resolvable:$true] %s18_s14 }
   0x4   :  { %s20_s16 = sshll.u32 %s744_s15, 4  ;;  %s28_s19 = sshll.u32 %s1152_s1, 4  ;;  %s21_s16 = int_to_ptr.vmem [resolvable:$true] %s20_s16  ;;  %s29_s19 = int_to_ptr.hbm [resolvable:$true] %s28_s19 }
   0x5   :  { %23 = dma.hbm_to_vmem [thread:$0]  %s19_s14, 128, %s21_s16, [#allocation3]  }
   0x6   :  { %s745_s20 = smov [#allocation5]   ;;  %s746_s22 = smov 128  }
   0x7   :  { %s30_s21 = sshll.u32 %s745_s20, 4  ;;  %s747_s23 = smov 8   ;;  %s31_s21 = int_to_ptr.vmem [resolvable:$true] %s30_s21 }
   0x8   :  { %36 = dma.hbm_to_vmem [thread:$0]  %s29_s19, 2048, %s31_s21, [#allocation6], %s746_s22, %s746_s22, %s747_s23  }
   0x9   :  { %728 = dma.done.wait [#allocation3], 128  }
   0xa   :  { %729 = vsyncadd [#allocation3], 4294967168 }
   0xb   :  { %730 = dma.done.wait [#allocation6], 2048  }
   0xc   :  { %731 = vsyncadd [#allocation6], 4294965248  ;;  %v777_v0 = vld [vmem:[#allocation5] sm:$0xff]  ;;  %v780_v1 = vld [vmem:[#allocation5 + $0x8] sm:$0xff]  ;;  %v159_v32 = vlaneseq  ;;  %v748_v37 = vmov 0.0   ;;  %s979_s0 = smov 1  }
   0xd   :  { %62 = vxpose.xlu0.b32.start [1/16] %v777_v0, 128  ;;  %v783_v2 = vld [vmem:[#allocation5 + $0x10] sm:$0xff]  ;;  %v786_v3 = vld [vmem:[#allocation5 + $0x18] sm:$0xff]  ;;  %v789_v4 = vld [vmem:[#allocation5 + $0x20] sm:$0xff] }
   0xe   :  { %v792_v5 = vld [vmem:[#allocation5 + $0x28] sm:$0xff]  ;;  %v795_v6 = vld [vmem:[#allocation5 + $0x30] sm:$0xff]  ;;  %v798_v7 = vld [vmem:[#allocation5 + $0x38] sm:$0xff]  ;;  %v889_v33 = vshrl.u32 %v159_v32, 7  ;;  %v891_v34 = vand.u32 127, %v159_v32 }
   0xf   :  { %v801_v8 = vld [vmem:[#allocation5 + $0x40] sm:$0xff]  ;;  %v804_v9 = vld [vmem:[#allocation5 + $0x48] sm:$0xff]  ;;  %v807_v10 = vld [vmem:[#allocation5 + $0x50] sm:$0xff] }
  0x10   :  { %v810_v11 = vld [vmem:[#allocation5 + $0x78] sm:$0xff]  ;;  %v814_v12 = vld [vmem:[#allocation5 + $0x70] sm:$0xff]  ;;  %v820_v13 = vld [vmem:[#allocation5 + $0x68] sm:$0xff]  ;;  %vm178_vm0 = vcmp.eq.s32.totalorder %v889_v33, %v891_v34  ;;  %v161_v40 = vadd.s32 8, %v889_v33  ;;  %v162_v45 = vadd.s32 16, %v889_v33  ;;  %v163_v50 = vadd.s32 24, %v889_v33 }
  0x11   :  { %94 = vmatpush.msra.mxu0 %v810_v11  ;;  %565 = vmatpush.msra.mxu2 %v810_v11  ;;  %v824_v14 = vld [vmem:[#allocation5 + $0x58] sm:$0xff]  ;;  %v828_v15 = vld [vmem:[#allocation5 + $0x60] sm:$0xff]  ;;  %v194_v38 = vsel %vm178_vm0, 1.0, %v748_v37  ;;  %v164_v56 = vadd.s32 32, %v889_v33  ;;  %v165_v60 = vadd.s32 40, %v889_v33  ;;  %v169_v32 = vadd.s32 72, %v889_v33 }
  0x12   :  { %566 = vmatpush.msra.mxu3 %v810_v11  ;;  %242 = vmatpush.msra.mxu1 %v810_v11  ;;  %v45_v28 = vld [vmem:[#allocation2] sm:$0xff]  ;;  %vm179_vm1 = vcmp.eq.s32.totalorder %v161_v40, %v891_v34  ;;  %vm180_vm2 = vcmp.eq.s32.totalorder %v162_v45, %v891_v34  ;;  %vm181_vm3 = vcmp.eq.s32.totalorder %v163_v50, %v891_v34  ;;  %v170_v40 = vadd.s32 80, %v889_v33 }
  0x13   :  { %95 = vmatpush.msra.mxu0 %v814_v12  ;;  %567 = vmatpush.msra.mxu2 %v814_v12  ;;  %v195_v43 = vsel %vm179_vm1, 1.0, %v748_v37  ;;  %v196_v48 = vsel %vm180_vm2, 1.0, %v748_v37  ;;  %v197_v53 = vsel %vm181_vm3, 1.0, %v748_v37  ;;  %vm182_vm4 = vcmp.eq.s32.totalorder %v164_v56, %v891_v34 }
  0x14   :  { %568 = vmatpush.msra.mxu3 %v814_v12  ;;  %243 = vmatpush.msra.mxu1 %v814_v12  ;;  %v198_v58 = vsel %vm182_vm4, 1.0, %v748_v37  ;;  %vm183_vm5 = vcmp.eq.s32.totalorder %v165_v60, %v891_v34  ;;  %vm187_vm9 = vcmp.eq.s32.totalorder %v169_v32, %v891_v34  ;;  %vm188_vm10 = vcmp.eq.s32.totalorder %v170_v40, %v891_v34 }
  0x15   :  { %63 = vxpose.xlu0.b32.cont [2/16] %v780_v1, 128  ;;  %96 = vmatpush.msra.mxu0 %v820_v13  ;;  %v199_v63 = vsel %vm183_vm5, 1.0, %v748_v37 }
  0x16   :  { %569 = vmatpush.msra.mxu2 %v820_v13  ;;  %570 = vmatpush.msra.mxu3 %v820_v13 }
  0x17   :  { %244 = vmatpush.msra.mxu1 %v820_v13  ;;  %97 = vmatpush.msra.mxu0 %v828_v15 }
  0x18   :  { %571 = vmatpush.msra.mxu2 %v828_v15  ;;  %572 = vmatpush.msra.mxu3 %v828_v15 }
  0x19   :  { %98 = vmatpush.msra.mxu0 %v824_v14  ;;  %245 = vmatpush.msra.mxu1 %v828_v15 }
  0x1a   :  { %573 = vmatpush.msra.mxu2 %v824_v14  ;;  %574 = vmatpush.msra.mxu3 %v824_v14 }
  0x1b   :  { %99 = vmatpush.msra.mxu0 %v807_v10  ;;  %246 = vmatpush.msra.mxu1 %v824_v14 }
  0x1c   :  { %575 = vmatpush.msra.mxu2 %v807_v10  ;;  %576 = vmatpush.msra.mxu3 %v807_v10 }
  0x1d   :  { %64 = vxpose.xlu0.b32.cont [3/16] %v783_v2, 128  ;;  %100 = vmatpush.msra.mxu0 %v804_v9 }
  0x1e   :  { %577 = vmatpush.msra.mxu2 %v804_v9  ;;  %578 = vmatpush.msra.mxu3 %v804_v9 }
  0x1f   :  { %247 = vmatpush.msra.mxu1 %v807_v10  ;;  %101 = vmatpush.msra.mxu0 %v801_v8 }
  0x20   :  { %579 = vmatpush.msra.mxu2 %v801_v8  ;;  %580 = vmatpush.msra.mxu3 %v801_v8 }
  0x21   :  { %102 = vmatpush.msra.mxu0 %v798_v7  ;;  %248 = vmatpush.msra.mxu1 %v804_v9 }
  0x22   :  { %581 = vmatpush.msra.mxu2 %v798_v7  ;;  %582 = vmatpush.msra.mxu3 %v798_v7 }
  0x23   :  { %103 = vmatpush.msra.mxu0 %v795_v6  ;;  %249 = vmatpush.msra.mxu1 %v801_v8 }
  0x24   :  { %583 = vmatpush.msra.mxu2 %v795_v6  ;;  %584 = vmatpush.msra.mxu3 %v795_v6 }
  0x25   :  { %65 = vxpose.xlu0.b32.cont [4/16] %v786_v3, 128  ;;  %104 = vmatpush.msra.mxu0 %v792_v5 }
  0x26   :  { %585 = vmatpush.msra.mxu2 %v792_v5  ;;  %586 = vmatpush.msra.mxu3 %v792_v5 }
  0x27   :  { %250 = vmatpush.msra.mxu1 %v798_v7  ;;  %105 = vmatpush.msra.mxu0 %v789_v4 }
  0x28   :  { %587 = vmatpush.msra.mxu2 %v789_v4  ;;  %588 = vmatpush.msra.mxu3 %v789_v4 }
  0x29   :  { %106 = vmatpush.msra.mxu0 %v786_v3  ;;  %251 = vmatpush.msra.mxu1 %v795_v6 }
  0x2a   :  { %589 = vmatpush.msra.mxu2 %v786_v3  ;;  %590 = vmatpush.msra.mxu3 %v786_v3 }
  0x2b   :  { %107 = vmatpush.msra.mxu0 %v783_v2  ;;  %252 = vmatpush.msra.mxu1 %v792_v5 }
  0x2c   :  { %591 = vmatpush.msra.mxu2 %v783_v2  ;;  %592 = vmatpush.msra.mxu3 %v783_v2 }
  0x2d   :  { %66 = vxpose.xlu0.b32.cont [5/16] %v789_v4, 128  ;;  %108 = vmatpush.msra.mxu0 %v780_v1 }
  0x2e   :  { %593 = vmatpush.msra.mxu2 %v780_v1  ;;  %594 = vmatpush.msra.mxu3 %v780_v1 }
  0x2f   :  { %253 = vmatpush.msra.mxu1 %v789_v4  ;;  %109 = vmatpush.msra.mxu0 %v777_v0 }
  0x30   :  { %595 = vmatpush.msra.mxu2 %v777_v0  ;;  %596 = vmatpush.msra.mxu3 %v777_v0 }
  0x31   :  { %254 = vmatpush.msra.mxu1 %v786_v3 }
  0x33   :  { %255 = vmatpush.msra.mxu1 %v783_v2 }
  0x35   :  { %67 = vxpose.xlu0.b32.cont [6/16] %v792_v5, 128  ;;  %256 = vmatpush.msra.mxu1 %v780_v1 }
  0x37   :  { %257 = vmatpush.msra.mxu1 %v777_v0 }
  0x38   :  { %258 = vmatmul.f32.vlgmr.msra.gmra.mxu1 %v45_v28 }
  0x3d   :  { %68 = vxpose.xlu0.b32.cont [7/16] %v795_v6, 128 }
  0x45   :  { %69 = vxpose.xlu0.b32.cont [8/16] %v798_v7, 128 }
  0x4d   :  { %70 = vxpose.xlu0.b32.cont [9/16] %v801_v8, 128 }
  0x55   :  { %71 = vxpose.xlu0.b32.cont [10/16] %v804_v9, 128 }
  0x5d   :  { %72 = vxpose.xlu0.b32.cont [11/16] %v807_v10, 128 }
  0x65   :  { %73 = vxpose.xlu0.b32.cont [12/16] %v824_v14, 128 }
  0x6d   :  { %74 = vxpose.xlu0.b32.cont [13/16] %v828_v15, 128 }
  0x75   :  { %75 = vxpose.xlu0.b32.cont [14/16] %v820_v13, 128 }
  0x7d   :  { %76 = vxpose.xlu0.b32.cont [15/16] %v814_v12, 128 }
  0x85   :  { %77 = vxpose.xlu0.b32.end [16/16] %v810_v11, 128 }
  0xb1   :  { %v78_v16 = vpop.trf.xlu0 }
  0xb2   :  { %110 = vmatmul.f32.vlgmr.msra.gmra.mxu0 %v78_v16 }
  0xb9   :  { %v79_v17 = vpop.trf.xlu0 }
  0xba   :  { %113 = vmatmul.f32.gmra.mxu0 %v79_v17  ;;  %v166_v17 = vadd.s32 48, %v889_v33 }
  0xbc   :  { %vm184_vm6 = vcmp.eq.s32.totalorder %v166_v17, %v891_v34 }
  0xc1   :  { %v80_v18 = vpop.trf.xlu0 }
  0xc2   :  { %116 = vmatmul.f32.gmra.mxu0 %v80_v18 }
  0xc9   :  { %v81_v19 = vpop.trf.xlu0 }
  0xca   :  { %119 = vmatmul.f32.gmra.mxu0 %v81_v19 }
  0xd1   :  { %v82_v20 = vpop.trf.xlu0 }
  0xd2   :  { %122 = vmatmul.f32.vlgmr.msra.gmra.mxu2 %v82_v20  ;;  %v200_v20 = vsel %vm184_vm6, 1.0, %v748_v37 }
  0xd9   :  { %v83_v21 = vpop.trf.xlu0 }
  0xda   :  { %125 = vmatmul.f32.gmra.mxu2 %v83_v21 }
  0xe1   :  { %v84_v22 = vpop.trf.xlu0 }
  0xe2   :  { %128 = vmatmul.f32.gmra.mxu2 %v84_v22  ;;  %v167_v22 = vadd.s32 56, %v889_v33 }
  0xe4   :  { %vm185_vm7 = vcmp.eq.s32.totalorder %v167_v22, %v891_v34  ;;  %v174_v22 = vadd.s32 112, %v889_v33 }
  0xe6   :  { %vm192_vm14 = vcmp.eq.s32.totalorder %v174_v22, %v891_v34 }
  0xe9   :  { %v85_v23 = vpop.trf.xlu0 }
  0xea   :  { %131 = vmatmul.f32.gmra.mxu2 %v85_v23 }
  0xf1   :  { %v86_v24 = vpop.trf.xlu0 }
  0xf2   :  { %134 = vmatmul.f32.gmra.mxu2 %v86_v24 }
  0xf9   :  { %v87_v25 = vpop.trf.xlu0 }
  0xfa   :  { %137 = vmatmul.f32.vlgmr.msra.gmra.mxu3 %v87_v25  ;;  %v201_v25 = vsel %vm185_vm7, 1.0, %v748_v37 }
 0x101   :  { %v88_v26 = vpop.trf.xlu0 }
 0x102   :  { %140 = vmatmul.f32.gmra.mxu3 %v88_v26 }
 0x109   :  { %v89_v27 = vpop.trf.xlu0 }
 0x10a   :  { %143 = vmatmul.f32.gmra.mxu3 %v89_v27  ;;  %v168_v27 = vadd.s32 64, %v889_v33 }
 0x10c   :  { %vm186_vm8 = vcmp.eq.s32.totalorder %v168_v27, %v891_v34 }
 0x111   :  { %v90_v29 = vpop.trf.xlu0 }
 0x112   :  { %146 = vmatmul.f32.gmra.mxu3 %v90_v29 }
 0x119   :  { %v91_v30 = vpop.trf.xlu0 }
 0x11a   :  { %149 = vmatmul.f32.gmra.mxu3 %v91_v30  ;;  %v202_v30 = vsel %vm186_vm8, 1.0, %v748_v37 }
 0x121   :  { %v92_v31 = vpop.trf.xlu0 }
 0x122   :  { %152 = vmatmul.f32.gmra.mxu3 %v92_v31 }
 0x129   :  { %v93_v35 = vpop.trf.xlu0 }
 0x12a   :  { %155 = vmatmul.f32.gmra.mxu3 %v93_v35 }
 0x12f   :  { %v111_v36 = vpop.f32.mrf.mxu0 }
 0x130   :  { %v210_v39 = vmul.f32 0.0001953125, %v111_v36 }
 0x132   :  { %v897_v41 = vsub.f32 %v194_v38, %v210_v39  ;;  %v203_v38 = vsel %vm187_vm9, 1.0, %v748_v37 }
 0x137   :  { %v114_v42 = vpop.f32.mrf.mxu0 }
 0x138   :  { %v211_v44 = vmul.f32 0.0001953125, %v114_v42 }
 0x13a   :  { %v902_v46 = vsub.f32 %v195_v43, %v211_v44  ;;  %v204_v44 = vsel %vm188_vm10, 1.0, %v748_v37 }
 0x13f   :  { %v117_v47 = vpop.f32.mrf.mxu0 }
 0x140   :  { %v212_v49 = vmul.f32 0.0001953125, %v117_v47  ;;  %v171_v47 = vadd.s32 88, %v889_v33 }
 0x142   :  { %v907_v51 = vsub.f32 %v196_v48, %v212_v49  ;;  %v259_v49 = vpop.f32.mrf.mxu1  ;;  %vm189_vm11 = vcmp.eq.s32.totalorder %v171_v47, %v891_v34 }
 0x143   :  { %v949_v50 = vmul.f32 0.0001953125, %v259_v49 }
 0x147   :  { %v120_v52 = vpop.f32.mrf.mxu0 }
 0x148   :  { %v213_v54 = vmul.f32 0.0001953125, %v120_v52  ;;  %v555_v52 = vclamps-f32 %v949_v50, 0.005 }
 0x14a   :  { %v911_v55 = vsub.f32 %v197_v53, %v213_v54  ;;  %v205_v54 = vsel %vm189_vm11, 1.0, %v748_v37  ;;  %v265_v56 = vsub.f32 %v949_v50, %v555_v52  }
 0x155   :  { %v123_v57 = vpop.f32.mrf.mxu2 }
 0x156   :  { %v214_v59 = vmul.f32 0.0001953125, %v123_v57 }
 0x158   :  { %v917_v61 = vsub.f32 %v198_v58, %v214_v59  ;;  %v172_v58 = vadd.s32 96, %v889_v33 }
 0x15a   :  { %vm190_vm12 = vcmp.eq.s32.totalorder %v172_v58, %v891_v34 }
 0x15d   :  { %v126_v62 = vpop.f32.mrf.mxu2 }
 0x15e   :  { %v215_v16 = vmul.f32 0.0001953125, %v126_v62  ;;  %v206_v62 = vsel %vm190_vm12, 1.0, %v748_v37 }
 0x160   :  { %v922_v18 = vsub.f32 %v199_v63, %v215_v16  ;;  %v173_v16 = vadd.s32 104, %v889_v33 }
 0x162   :  { %vm191_vm13 = vcmp.eq.s32.totalorder %v173_v16, %v891_v34 }
 0x165   :  { %v129_v19 = vpop.f32.mrf.mxu2 }
 0x166   :  { %v216_v21 = vmul.f32 0.0001953125, %v129_v19 }
 0x168   :  { %v927_v23 = vsub.f32 %v200_v20, %v216_v21  ;;  %v207_v20 = vsel %vm191_vm13, 1.0, %v748_v37 }
 0x16d   :  { %v132_v24 = vpop.f32.mrf.mxu2 }
 0x16e   :  { %v217_v26 = vmul.f32 0.0001953125, %v132_v24 }
 0x170   :  { %v932_v28 = vsub.f32 %v201_v25, %v217_v26  ;;  %v208_v26 = vsel %vm192_vm14, 1.0, %v748_v37 }
 0x175   :  { %v135_v29 = vpop.f32.mrf.mxu2 }
 0x176   :  { %v218_v31 = vmul.f32 0.0001953125, %v135_v29  ;;  %v175_v29 = vadd.s32 120, %v889_v33 }
 0x178   :  { %v937_v35 = vsub.f32 %v202_v30, %v218_v31  ;;  %vm193_vm15 = vcmp.eq.s32.totalorder %v175_v29, %v891_v34 }
 0x179   :  { %v209_v32 = vsel %vm193_vm15, 1.0, %v748_v37 }
 0x17d   :  { %v138_v36 = vpop.f32.mrf.mxu3 }
 0x17e   :  { %v219_v39 = vmul.f32 0.0001953125, %v138_v36 }
 0x180   :  { %v942_v42 = vsub.f32 %v203_v38, %v219_v39 }
 0x185   :  { %v141_v43 = vpop.f32.mrf.mxu3 }
 0x186   :  { %v220_v45 = vmul.f32 0.0001953125, %v141_v43 }
 0x188   :  { %v947_v48 = vsub.f32 %v204_v44, %v220_v45 }
 0x18d   :  { %v144_v53 = vpop.f32.mrf.mxu3 }
 0x18e   :  { %v221_v57 = vmul.f32 0.0001953125, %v144_v53 }
 0x190   :  { %v956_v59 = vsub.f32 %v205_v54, %v221_v57 }
 0x195   :  { %v147_v60 = vpop.f32.mrf.mxu3 }
 0x196   :  { %v222_v63 = vmul.f32 0.0001953125, %v147_v60 }
 0x198   :  { %v961_v17 = vsub.f32 %v206_v62, %v222_v63 }
 0x19d   :  { %v150_v19 = vpop.f32.mrf.mxu3 }
 0x19e   :  { %v223_v21 = vmul.f32 0.0001953125, %v150_v19 }
 0x1a0   :  { %v966_v24 = vsub.f32 %v207_v20, %v223_v21 }
 0x1a5   :  { %v153_v25 = vpop.f32.mrf.mxu3 }
 0x1a6   :  { %v224_v27 = vmul.f32 0.0001953125, %v153_v25 }
 0x1a8   :  { %v971_v30 = vsub.f32 %v208_v26, %v224_v27 }
 0x1ad   :  { %v156_v31 = vpop.f32.mrf.mxu3 }
 0x1ae   :  { %v225_v36 = vmul.f32 0.0001953125, %v156_v31 }
 0x1b0   :  { %v975_v38 = vsub.f32 %v209_v32, %v225_v36 }
 0x1b1 LB: > { %s487_s0 = sadd.s32 8, %s742_s0   ;;  %s742_s0 = sphi %s979_s0, %s487_s0   ;;  %v738_v56 = vphi %v265_v56, %v1155_v56  }
 0x1b2   : > { %276 = vmatpush.msra.mxu0 %v975_v38  ;;  %299 = vmatpush.msra.mxu1 %v975_v38  ;;  %p270_p3 = scmp.lt.s32.totalorder %s487_s0, 1000 }
 0x1b3   : > { %322 = vmatpush.msra.mxu2 %v975_v38  ;;  %345 = vmatpush.msra.mxu3 %v975_v38 }
 0x1b4   : > { %277 = vmatpush.msra.mxu0 %v971_v30  ;;  %300 = vmatpush.msra.mxu1 %v971_v30 }
 0x1b5   : > { %323 = vmatpush.msra.mxu2 %v971_v30  ;;  %346 = vmatpush.msra.mxu3 %v971_v30 }
 0x1b6   : > { %278 = vmatpush.msra.mxu0 %v966_v24  ;;  %301 = vmatpush.msra.mxu1 %v966_v24 }
 0x1b7   : > { %324 = vmatpush.msra.mxu2 %v966_v24  ;;  %347 = vmatpush.msra.mxu3 %v966_v24 }
 0x1b8   : > { %279 = vmatpush.msra.mxu0 %v961_v17  ;;  %302 = vmatpush.msra.mxu1 %v961_v17 }
 0x1b9   : > { %325 = vmatpush.msra.mxu2 %v961_v17  ;;  %348 = vmatpush.msra.mxu3 %v961_v17 }
 0x1ba   : > { %280 = vmatpush.msra.mxu0 %v956_v59  ;;  %303 = vmatpush.msra.mxu1 %v956_v59 }
 0x1bb   : > { %326 = vmatpush.msra.mxu2 %v956_v59  ;;  %349 = vmatpush.msra.mxu3 %v956_v59 }
 0x1bc   : > { %281 = vmatpush.msra.mxu0 %v947_v48  ;;  %304 = vmatpush.msra.mxu1 %v947_v48 }
 0x1bd   : > { %327 = vmatpush.msra.mxu2 %v947_v48  ;;  %350 = vmatpush.msra.mxu3 %v947_v48 }
 0x1be   : > { %282 = vmatpush.msra.mxu0 %v942_v42  ;;  %305 = vmatpush.msra.mxu1 %v942_v42 }
 0x1bf   : > { %328 = vmatpush.msra.mxu2 %v942_v42  ;;  %351 = vmatpush.msra.mxu3 %v942_v42 }
 0x1c0   : > { %283 = vmatpush.msra.mxu0 %v937_v35  ;;  %306 = vmatpush.msra.mxu1 %v937_v35 }
 0x1c1   : > { %329 = vmatpush.msra.mxu2 %v937_v35  ;;  %352 = vmatpush.msra.mxu3 %v937_v35 }
 0x1c2   : > { %284 = vmatpush.msra.mxu0 %v932_v28  ;;  %307 = vmatpush.msra.mxu1 %v932_v28 }
 0x1c3   : > { %330 = vmatpush.msra.mxu2 %v932_v28  ;;  %353 = vmatpush.msra.mxu3 %v932_v28 }
 0x1c4   : > { %285 = vmatpush.msra.mxu0 %v927_v23  ;;  %308 = vmatpush.msra.mxu1 %v927_v23 }
 0x1c5   : > { %331 = vmatpush.msra.mxu2 %v927_v23  ;;  %354 = vmatpush.msra.mxu3 %v927_v23 }
 0x1c6   : > { %286 = vmatpush.msra.mxu0 %v922_v18  ;;  %309 = vmatpush.msra.mxu1 %v922_v18 }
 0x1c7   : > { %332 = vmatpush.msra.mxu2 %v922_v18  ;;  %355 = vmatpush.msra.mxu3 %v922_v18 }
 0x1c8   : > { %287 = vmatpush.msra.mxu0 %v917_v61  ;;  %310 = vmatpush.msra.mxu1 %v917_v61 }
 0x1c9   : > { %333 = vmatpush.msra.mxu2 %v917_v61  ;;  %356 = vmatpush.msra.mxu3 %v917_v61 }
 0x1ca   : > { %288 = vmatpush.msra.mxu0 %v911_v55  ;;  %311 = vmatpush.msra.mxu1 %v911_v55 }
 0x1cb   : > { %334 = vmatpush.msra.mxu2 %v911_v55  ;;  %357 = vmatpush.msra.mxu3 %v911_v55 }
 0x1cc   : > { %289 = vmatpush.msra.mxu0 %v907_v51  ;;  %312 = vmatpush.msra.mxu1 %v907_v51 }
 0x1cd   : > { %335 = vmatpush.msra.mxu2 %v907_v51  ;;  %358 = vmatpush.msra.mxu3 %v907_v51 }
 0x1ce   : > { %290 = vmatpush.msra.mxu0 %v902_v46  ;;  %313 = vmatpush.msra.mxu1 %v902_v46 }
 0x1cf   : > { %336 = vmatpush.msra.mxu2 %v902_v46  ;;  %359 = vmatpush.msra.mxu3 %v902_v46 }
 0x1d0   : > { %291 = vmatpush.msra.mxu0 %v897_v41  ;;  %314 = vmatpush.msra.mxu1 %v897_v41 }
 0x1d1   : > { %292 = vmatmul.f32.vlgmr.msra.gmra.mxu0 %v738_v56  ;;  %337 = vmatpush.msra.mxu2 %v897_v41 }
 0x1d2   : > { %360 = vmatpush.msra.mxu3 %v897_v41  ;;  %368 = vmatpush.msrb.mxu0 %v975_v38 }
 0x1d3   : > { %391 = vmatpush.msrb.mxu1 %v975_v38  ;;  %414 = vmatpush.msrb.mxu2 %v975_v38 }
 0x1d4   : > { %369 = vmatpush.msrb.mxu0 %v971_v30  ;;  %437 = vmatpush.msrb.mxu3 %v975_v38 }
 0x1d5   : > { %392 = vmatpush.msrb.mxu1 %v971_v30  ;;  %415 = vmatpush.msrb.mxu2 %v971_v30 }
 0x1d6   : > { %370 = vmatpush.msrb.mxu0 %v966_v24  ;;  %438 = vmatpush.msrb.mxu3 %v971_v30 }
 0x1d7   : > { %393 = vmatpush.msrb.mxu1 %v966_v24  ;;  %416 = vmatpush.msrb.mxu2 %v966_v24 }
 0x1d8   : > { %371 = vmatpush.msrb.mxu0 %v961_v17  ;;  %439 = vmatpush.msrb.mxu3 %v966_v24 }
 0x1d9   : > { %394 = vmatpush.msrb.mxu1 %v961_v17  ;;  %417 = vmatpush.msrb.mxu2 %v961_v17 }
 0x1da   : > { %372 = vmatpush.msrb.mxu0 %v956_v59  ;;  %440 = vmatpush.msrb.mxu3 %v961_v17 }
 0x1db   : > { %395 = vmatpush.msrb.mxu1 %v956_v59  ;;  %418 = vmatpush.msrb.mxu2 %v956_v59 }
 0x1dc   : > { %373 = vmatpush.msrb.mxu0 %v947_v48  ;;  %441 = vmatpush.msrb.mxu3 %v956_v59 }
 0x1dd   : > { %396 = vmatpush.msrb.mxu1 %v947_v48  ;;  %419 = vmatpush.msrb.mxu2 %v947_v48 }
 0x1de   : > { %374 = vmatpush.msrb.mxu0 %v942_v42  ;;  %442 = vmatpush.msrb.mxu3 %v947_v48 }
 0x1df   : > { %397 = vmatpush.msrb.mxu1 %v942_v42  ;;  %420 = vmatpush.msrb.mxu2 %v942_v42 }
 0x1e0   : > { %375 = vmatpush.msrb.mxu0 %v937_v35  ;;  %443 = vmatpush.msrb.mxu3 %v942_v42 }
 0x1e1   : > { %398 = vmatpush.msrb.mxu1 %v937_v35  ;;  %421 = vmatpush.msrb.mxu2 %v937_v35 }
 0x1e2   : > { %376 = vmatpush.msrb.mxu0 %v932_v28  ;;  %444 = vmatpush.msrb.mxu3 %v937_v35 }
 0x1e3   : > { %399 = vmatpush.msrb.mxu1 %v932_v28  ;;  %422 = vmatpush.msrb.mxu2 %v932_v28 }
 0x1e4   : > { %377 = vmatpush.msrb.mxu0 %v927_v23  ;;  %445 = vmatpush.msrb.mxu3 %v932_v28 }
 0x1e5   : > { %400 = vmatpush.msrb.mxu1 %v927_v23  ;;  %423 = vmatpush.msrb.mxu2 %v927_v23 }
 0x1e6   : > { %378 = vmatpush.msrb.mxu0 %v922_v18  ;;  %446 = vmatpush.msrb.mxu3 %v927_v23 }
 0x1e7   : > { %401 = vmatpush.msrb.mxu1 %v922_v18  ;;  %424 = vmatpush.msrb.mxu2 %v922_v18 }
 0x1e8   : > { %379 = vmatpush.msrb.mxu0 %v917_v61  ;;  %447 = vmatpush.msrb.mxu3 %v922_v18 }
 0x1e9   : > { %402 = vmatpush.msrb.mxu1 %v917_v61  ;;  %425 = vmatpush.msrb.mxu2 %v917_v61 }
 0x1ea   : > { %380 = vmatpush.msrb.mxu0 %v911_v55  ;;  %448 = vmatpush.msrb.mxu3 %v917_v61 }
 0x1eb   : > { %403 = vmatpush.msrb.mxu1 %v911_v55  ;;  %426 = vmatpush.msrb.mxu2 %v911_v55 }
 0x1ec   : > { %381 = vmatpush.msrb.mxu0 %v907_v51  ;;  %449 = vmatpush.msrb.mxu3 %v911_v55 }
 0x1ed   : > { %404 = vmatpush.msrb.mxu1 %v907_v51  ;;  %427 = vmatpush.msrb.mxu2 %v907_v51 }
 0x1ee   : > { %382 = vmatpush.msrb.mxu0 %v902_v46  ;;  %450 = vmatpush.msrb.mxu3 %v907_v51 }
 0x1ef   : > { %405 = vmatpush.msrb.mxu1 %v902_v46  ;;  %428 = vmatpush.msrb.mxu2 %v902_v46 }
 0x1f0   : > { %383 = vmatpush.msrb.mxu0 %v897_v41  ;;  %451 = vmatpush.msrb.mxu3 %v902_v46 }
 0x1f1   : > { %406 = vmatpush.msrb.mxu1 %v897_v41  ;;  %429 = vmatpush.msrb.mxu2 %v897_v41 }
 0x1f2   : > { %452 = vmatpush.msrb.mxu3 %v897_v41 }
 0x24e   : > { %v293_v33 = vpop.f32.mrf.mxu0 }
 0x24f   : > { %v294_v34 = vadd.f32 %v293_v33, %v949_v50 }
 0x251   : > { %v556_v37 = vclamps-f32 %v294_v34, 0.005 }
 0x253   : > { %v298_v39 = vsub.f32 %v294_v34, %v556_v37 }
 0x255   : > { %315 = vmatmul.f32.vlgmr.msra.gmra.mxu1 %v298_v39 }
 0x2d2   : > { %v316_v40 = vpop.f32.mrf.mxu1 }
 0x2d3   : > { %v317_v43 = vadd.f32 %v316_v40, %v949_v50 }
 0x2d5   : > { %v557_v44 = vclamps-f32 %v317_v43, 0.005 }
 0x2d7   : > { %v321_v45 = vsub.f32 %v317_v43, %v557_v44 }
 0x2d9   : > { %338 = vmatmul.f32.vlgmr.msra.gmra.mxu2 %v321_v45 }
 0x35c   : > { %v339_v47 = vpop.f32.mrf.mxu2 }
 0x35d   : > { %v340_v49 = vadd.f32 %v339_v47, %v949_v50 }
 0x35f   : > { %v558_v52 = vclamps-f32 %v340_v49, 0.005 }
 0x361   : > { %v344_v53 = vsub.f32 %v340_v49, %v558_v52 }
 0x363   : > { %361 = vmatmul.f32.vlgmr.msra.gmra.mxu3 %v344_v53 }
 0x3e6   : > { %v362_v54 = vpop.f32.mrf.mxu3 }
 0x3e7   : > { %v363_v56 = vadd.f32 %v362_v54, %v949_v50 }
 0x3e9   : > { %v559_v57 = vclamps-f32 %v363_v56, 0.005 }
 0x3eb   : > { %v367_v58 = vsub.f32 %v363_v56, %v559_v57 }
 0x3ed   : > { %384 = vmatmul.f32.vlgmr.msrb.gmra.mxu0 %v367_v58 }
 0x46a   : > { %v385_v60 = vpop.f32.mrf.mxu0 }
 0x46b   : > { %v386_v62 = vadd.f32 %v385_v60, %v949_v50 }
 0x46d   : > { %v560_v63 = vclamps-f32 %v386_v62, 0.005 }
 0x46f   : > { %v390_v16 = vsub.f32 %v386_v62, %v560_v63 }
 0x471   : > { %407 = vmatmul.f32.vlgmr.msrb.gmra.mxu1 %v390_v16 }
 0x4ee   : > { %v408_v19 = vpop.f32.mrf.mxu1 }
 0x4ef   : > { %v409_v20 = vadd.f32 %v408_v19, %v949_v50 }
 0x4f1   : > { %v561_v21 = vclamps-f32 %v409_v20, 0.005 }
 0x4f3   : > { %v413_v22 = vsub.f32 %v409_v20, %v561_v21 }
 0x4f5   : > { %430 = vmatmul.f32.vlgmr.msrb.gmra.mxu2 %v413_v22 }
 0x578   : > { %v431_v25 = vpop.f32.mrf.mxu2 }
 0x579   : > { %v432_v26 = vadd.f32 %v431_v25, %v949_v50 }
 0x57b   : > { %v562_v27 = vclamps-f32 %v432_v26, 0.005 }
 0x57d   : > { %v436_v29 = vsub.f32 %v432_v26, %v562_v27 }
 0x57f   : > { %453 = vmatmul.f32.vlgmr.msrb.gmra.mxu3 %v436_v29  ;;  %v471_v39 = vmul.f32 %v436_v29, %v436_v29 }
 0x602   : > { %v454_v31 = vpop.f32.mrf.mxu3 }
 0x603   : > { %v455_v32 = vadd.f32 %v454_v31, %v949_v50 }
 0x605   : > { %v563_v36 = vclamps-f32 %v455_v32, 0.005 }
 0x607   : > { %v459_v33 = vsub.f32 %v455_v32, %v563_v36  }
 0x609   : > { %v460_v34 = vsub.f32 %v459_v33, %v436_v29 }
 0x60b   : > { %v461_v37 = vmul.f32 %v460_v34, %v460_v34 }
 0x60d   : > { %462 = vadd.xlane.f32.xlu0 %v461_v37 }
 0x615   : > { %472 = vadd.xlane.f32.xlu0 %v471_v39 }
 0x680   : > { %v463_v40 = vpop.xlane.xlu0 %462 }
 0x681   : > { %v464_v43 = vrot.slane %v463_v40, 4 }
 0x683   : > { %v465_v44 = vadd.f32 %v464_v43, %v463_v40 }
 0x685   : > { %v466_v45 = vrot.slane %v465_v44, 2 }
 0x687   : > { %v467_v47 = vadd.f32 %v466_v45, %v465_v44 }
 0x688   : > { %v473_v49 = vpop.xlane.xlu0 %472 }
 0x689   : > { %v474_v52 = vrot.slane %v473_v49, 4  ;;  %v468_v53 = vrot.slane %v467_v47, 1 }
 0x68b   : > { %v475_v54 = vadd.f32 %v474_v52, %v473_v49  ;;  %v469_v56 = vadd.f32 %v468_v53, %v467_v47 }
 0x68d   : > { %v476_v57 = vrot.slane %v475_v54, 2  ;;  %597 = vpush %v469_v56  ;;  %v1155_v56 = vmov %v459_v33 }
 0x68f   : > { %v477_v58 = vadd.f32 %v476_v57, %v475_v54 }
 0x691   : > { %v478_v60 = vrot.slane %v477_v58, 1 }
 0x693   : > { %v479_v62 = vadd.f32 %v478_v60, %v477_v58 }
 0x695   : > { %599 = vpush %v479_v62 }
 0x6be   : > { %s598_s1 = spop %597 }
 0x6c6   : > { %s600_s24 = spop %599 }
 0x6c7   : > { %s482_s25 = smul.f32 0.0001, %s600_s24  ;;  %p481_p0 = scmp.gt.f32.partialorder %s600_s24, 0.0 }
 0x6c9   : > { %p483_p1 = scmp.lt.f32.partialorder %s598_s1, %s482_s25 }
 0x6cb   : > { %p484_p2 = pnand %p483_p1, %p481_p0 }
 0x6cd   : > { %p272_p4 = pnand %p484_p2, %p270_p3 }
 0x6ce   :  { %489 = vmatpush.xpose.msra.mxu0 (%p272_p4), %v810_v11  ;;  %488 = vst [vmem:[#allocation7] sm:$0xff] (%p272_p4), %v459_v33  ;;  %s749_s26 = smov (%p272_p4), [#allocation7]   ;;  %s517_s30 = sshll.u32 (%p272_p4), %s1153_s2, 4  ;;  %s518_s30 = int_to_ptr.hbm [resolvable:$true] %s517_s30 }
 0x6cf   :  { %275 = sbr.rel (!%p272_p4) target bundleno = 433 (0x1b1), region = 51  ;;  %s515_s27 = sshll.u32 (%p272_p4), %s749_s26, 4  ;;  %s516_s27 = int_to_ptr.vmem [resolvable:$true] %s515_s27 }
 0x6d0   :  { %520 = dma.vmem_to_hbm [thread:$0]  (%p272_p4), %s516_s27, 128, %s518_s30, [#allocation4]  }
 0x6d1   :  { %s750_s4 = smov (%p272_p4), [#allocation8]   ;;  %s528_s8 = sshll.u32 (%p272_p4), %s1154_s3, 4  ;;  %s529_s8 = int_to_ptr.hbm [resolvable:$true] %s528_s8 }
 0x6d2   :  { %490 = vmatpush.xpose.msra.mxu0 (%p272_p4), %v814_v12  ;;  %s526_s5 = sshll.u32 (%p272_p4), %s750_s4, 4  ;;  %s527_s5 = int_to_ptr.vmem [resolvable:$true] %s526_s5 }
 0x6d6   :  { %491 = vmatpush.xpose.msra.mxu0 %v820_v13 }
 0x6da   :  { %492 = vmatpush.xpose.msra.mxu0 %v828_v15 }
 0x6de   :  { %493 = vmatpush.xpose.msra.mxu0 %v824_v14 }
 0x6e2   :  { %494 = vmatpush.xpose.msra.mxu0 %v807_v10 }
 0x6e6   :  { %495 = vmatpush.xpose.msra.mxu0 %v804_v9 }
 0x6ea   :  { %496 = vmatpush.xpose.msra.mxu0 %v801_v8 }
 0x6ee   :  { %497 = vmatpush.xpose.msra.mxu0 %v798_v7 }
 0x6f2   :  { %498 = vmatpush.xpose.msra.mxu0 %v795_v6 }
 0x6f6   :  { %499 = vmatpush.xpose.msra.mxu0 %v792_v5 }
 0x6fa   :  { %500 = vmatpush.xpose.msra.mxu0 %v789_v4 }
 0x6fe   :  { %501 = vmatpush.xpose.msra.mxu0 %v786_v3 }
 0x702   :  { %502 = vmatpush.xpose.msra.mxu0 %v783_v2 }
 0x706   :  { %503 = vmatpush.xpose.msra.mxu0 %v780_v1 }
 0x70a   :  { %504 = vmatpush.xpose.msra.mxu0 %v777_v0 }
 0x70d   :  { %505 = vmatmul.f32.vlgmr.msra.gmra.mxu0 %v459_v33 }
 0x78a   :  { %v506_v1 = vpop.f32.mrf.mxu0 }
 0x78b   :  { %509 = vst [vmem:[#allocation8] sm:$0xff] %v506_v1 }
 0x78c   :  { %531 = dma.vmem_to_hbm [thread:$0]  %s527_s5, 128, %s529_s8, [#allocation9]  }
 0x78d   :  { %732 = dma.done.wait [#allocation4], 128  }
 0x78e   :  { %733 = vsyncadd [#allocation4], 4294967168 }
 0x78f   :  { %734 = dma.done.wait [#allocation9], 128  }
 0x790   :  { %735 = vsyncadd [#allocation9], 4294967168 }
 0x791   :  { %540 = vsyncpa [#allocation3], 1 }
 0x792   :  { %541 = vsyncpa [#allocation6], 1 }
 0x793   :  { %542 = vsyncpa [#allocation4], 1 }
 0x794   :  { %543 = vsyncpa [#allocation9], 1 }

</bundles_post_ra>
